<compile_context>
chip_gen: v7x
topology: tpu7x:2x2x1
jax: 0.10.0
libtpu: 0.0.40
codegen_flags: <defaults>
</compile_context>

<pallas_src>
import math

import jax
import jax.numpy as jnp
from jax.experimental import pallas as pl
from jax.experimental.pallas import tpu as pltpu


def _round_up(v, m):
    return (v + m - 1) // m * m


def _cdiv(a, b):
    return -(-a // b)


def _scorer_kernel(x_ref, y_ref, w1x_ref, w1y_ref, w1xy_ref, b1_ref,
                   w2_ref, b2_ref, o_ref):
    # Inputs arrive in native dtype; cast to bf16 in-kernel (VPU) so the
    # wrapper never pays a separate HBM cast pass.
    xb = x_ref[...].astype(jnp.bfloat16)            # (tm, H)
    yb = y_ref[...].astype(jnp.bfloat16)            # (tm, H)
    xyb = xb * yb                                   # bf16 elementwise product

    # h = [x, y, x*y] @ W1 as three accumulating MXU dots -> no lane concat.
    h = jnp.dot(xb, w1x_ref[...], preferred_element_type=jnp.float32)
    h = h + jnp.dot(yb, w1y_ref[...], preferred_element_type=jnp.float32)
    h = h + jnp.dot(xyb, w1xy_ref[...], preferred_element_type=jnp.float32)
    h = jnp.maximum(h + b1_ref[...], 0.0)           # bias + ReLU in f32

    # Dropout = identity (eval-mode forward).
    out = jnp.dot(h.astype(jnp.bfloat16), w2_ref[...],
                  preferred_element_type=jnp.float32) + b2_ref[...]
    o_ref[...] = out.astype(o_ref.dtype)            # lane-dense (tm, N_pad) store


def prepare_scorer_params(w1, b1, w2, b2):
    """One-time weight preparation (hoisted out of the forward pass).

    w1: (3H, D), b1: (D,), w2: (D, n_out), b2: (n_out,).
    Splits W1 into three (H, D_pad) bf16 slabs, pads hidden/out widths to
    lane-dense multiples of 128, reshapes biases to (1, width) f32 rows.
    """
    H3, D = w1.shape
    assert H3 % 3 == 0
    H = H3 // 3
    assert w2.shape[0] == D
    n_out = w2.shape[1]
    D_pad = _round_up(D, 128)
    N_pad = _round_up(n_out, 128)

    w1f = w1.astype(jnp.float32)
    pad_d = ((0, 0), (0, D_pad - D))
    w1x = jnp.pad(w1f[:H], pad_d).astype(jnp.bfloat16)
    w1y = jnp.pad(w1f[H:2 * H], pad_d).astype(jnp.bfloat16)
    w1xy = jnp.pad(w1f[2 * H:], pad_d).astype(jnp.bfloat16)
    b1p = jnp.pad(b1.astype(jnp.float32), (0, D_pad - D)).reshape(1, D_pad)
    w2p = jnp.pad(w2.astype(jnp.float32),
                  ((0, D_pad - D), (0, N_pad - n_out))).astype(jnp.bfloat16)
    b2p = jnp.pad(b2.astype(jnp.float32), (0, N_pad - n_out)).reshape(1, N_pad)

    return dict(w1x=w1x, w1y=w1y, w1xy=w1xy, b1=b1p, w2=w2p, b2=b2p,
                H=H, D=D, n_out=n_out, D_pad=D_pad, N_pad=N_pad)


def framenet_relation_scorer(x, y, params, *, tm=512, vmem_budget_bytes=32 << 20):
    """x, y: (..., H). params: output of prepare_scorer_params.

    Returns (..., n_out) in float32 (eval-mode forward; dropout = identity).
    """
    assert x.shape == y.shape
    lead_shape = x.shape[:-1]
    H = x.shape[-1]
    assert H == params["H"]
    M = math.prod(lead_shape) if lead_shape else 1
    D_pad, N_pad, n_out = params["D_pad"], params["N_pad"], params["n_out"]

    # Flatten leading dims (metadata-only reshape); no dtype cast, no row pad.
    x2 = x.reshape(M, H)
    y2 = y.reshape(M, H)
    in_bytes = jnp.dtype(x2.dtype).itemsize

    # Row tile: multiple of 16 (bf16 sublane pairs); >= 2 grid steps whenever M
    # allows it (keeps both v7x TensorCores busy under dimension_semantics);
    # clamped so the working set stays under the VMEM budget (v7x: 64 MiB).
    tm_eff = max(16, min(tm, _round_up(_cdiv(M, 2), 16)))

    def vmem_estimate(t):
        acts = 2 * 2 * t * H * in_bytes                    # x, y (double-buffered)
        wgt = 2 * (3 * H * D_pad + D_pad * N_pad) * 2      # bf16 weights (2 bufs)
        bias = 2 * (D_pad + N_pad) * 4
        outb = 2 * t * N_pad * 4                           # f32 out (double-buffered)
        tmp = t * (D_pad * 4 + 3 * H * 2)                  # h (f32) + bf16 temps
        return acts + wgt + bias + outb + tmp

    while vmem_estimate(tm_eff) > vmem_budget_bytes and tm_eff > 64:
        tm_eff = max(64, _round_up(tm_eff // 2, 16))

    grid = (_cdiv(M, tm_eff),)

    # Advisory cost for XLA's scheduler around the custom call.
    flops = 2 * M * (3 * H * D_pad + D_pad * N_pad)
    bytes_accessed = (2 * M * H * in_bytes                 # x, y
                      + (3 * H * D_pad + D_pad * N_pad) * 2  # bf16 weights
                      + (D_pad + N_pad) * 4                  # biases
                      + M * N_pad * 4)                       # output
    cost = pl.CostEstimate(flops=flops, transcendentals=0,
                           bytes_accessed=bytes_accessed)

    vmem_limit = int(min(64 << 20, max(16 << 20, int(1.5 * vmem_estimate(tm_eff)))))

    out = pl.pallas_call(
        _scorer_kernel,
        out_shape=jax.ShapeDtypeStruct((M, N_pad), jnp.float32),
        grid_spec=pltpu.PrefetchScalarGridSpec(
            num_scalar_prefetch=0,
            grid=grid,
            in_specs=[
                pl.BlockSpec((tm_eff, H), lambda i: (i, 0)),     # x tile (ragged last block ok)
                pl.BlockSpec((tm_eff, H), lambda i: (i, 0)),     # y tile
                pl.BlockSpec((H, D_pad), lambda i: (0, 0)),      # W1[:H]     (resident)
                pl.BlockSpec((H, D_pad), lambda i: (0, 0)),      # W1[H:2H]   (resident)
                pl.BlockSpec((H, D_pad), lambda i: (0, 0)),      # W1[2H:]    (resident)
                pl.BlockSpec((1, D_pad), lambda i: (0, 0)),      # b1         (resident)
                pl.BlockSpec((D_pad, N_pad), lambda i: (0, 0)),  # W2         (resident)
                pl.BlockSpec((1, N_pad), lambda i: (0, 0)),      # b2         (resident)
            ],
            out_specs=pl.BlockSpec((tm_eff, N_pad), lambda i: (i, 0)),
        ),
        compiler_params=pltpu.CompilerParams(
            dimension_semantics=("parallel",),
            vmem_limit_bytes=vmem_limit,
        ),
        cost_estimate=cost,
    )(x2, y2, params["w1x"], params["w1y"], params["w1xy"],
      params["b1"], params["w2"], params["b2"])

    return out[:, :n_out].reshape(*lead_shape, n_out)


def reference_forward_bf16(x, y, w1, b1, w2, b2):
    """Pure-JAX reference following the identical bf16-operand / f32-accumulate path."""
    H = x.shape[-1]
    xb = x.astype(jnp.bfloat16)
    yb = y.astype(jnp.bfloat16)
    xyb = xb * yb
    w1b = w1.astype(jnp.bfloat16)
    h = jnp.dot(xb, w1b[:H], preferred_element_type=jnp.float32)
    h = h + jnp.dot(yb, w1b[H:2 * H], preferred_element_type=jnp.float32)
    h = h + jnp.dot(xyb, w1b[2 * H:], preferred_element_type=jnp.float32)
    h = jnp.maximum(h + b1.astype(jnp.float32), 0.0)
    return jnp.dot(h.astype(jnp.bfloat16), w2.astype(jnp.bfloat16),
                   preferred_element_type=jnp.float32) + b2


def reference_forward_f32(x, y, w1, b1, w2, b2):
    feat = jnp.concatenate([x, y, x * y], axis=-1)
    h = jnp.maximum(feat @ w1 + b1, 0.0)
    return h @ w2 + b2


if __name__ == "__main__":
    # Small shapes consistent with the module: (batch, seq, hidden_dim) tokens.
    batch, seq, hidden_dim = 2, 8, 32
    linear_dim, n_out = 64, 16

    key = jax.random.PRNGKey(0)
    kx, ky, kw1, kb1, kw2, kb2 = jax.random.split(key, 6)

    x = jax.random.normal(kx, (batch, seq, hidden_dim), dtype=jnp.float32)
    y = jax.random.normal(ky, (batch, seq, hidden_dim), dtype=jnp.float32)

    # Deterministic synthetic parameters, (in_features, out_features) layout.
    w1 = jax.random.normal(kw1, (hidden_dim * 3, linear_dim), dtype=jnp.float32) * 0.05
    b1 = jax.random.normal(kb1, (linear_dim,), dtype=jnp.float32) * 0.05
    w2 = jax.random.normal(kw2, (linear_dim, n_out), dtype=jnp.float32) * 0.05
    b2 = jax.random.normal(kb2, (n_out,), dtype=jnp.float32) * 0.05

    # One-time weight preparation (hoisted out of the per-call forward path).
    params = jax.block_until_ready(prepare_scorer_params(w1, b1, w2, b2))

    forward = jax.jit(lambda xx, yy: framenet_relation_scorer(xx, yy, params))
    out = jax.block_until_ready(forward(x, y))
    assert out.shape == (batch, seq, n_out)
    assert out.dtype == jnp.float32

    # Check against a reference using the identical bf16-matmul / f32-accumulate path.
    ref = reference_forward_bf16(x, y, w1, b1, w2, b2)
    assert jnp.allclose(out, ref, atol=5e-3, rtol=5e-3), "mismatch vs bf16 reference"

    # Sanity check against full-f32 math (looser tolerance due to bf16 operands).
    ref_f32 = reference_forward_f32(x, y, w1, b1, w2, b2)
    assert jnp.allclose(out, ref_f32, atol=1e-1, rtol=1e-1), "mismatch vs f32 reference"

    print("KERNEL_OK")
</pallas_src>

<mosaic_0001>
module attributes {stable_mosaic.version = 11 : i64} {
  func.func @_scorer_kernel(%arg0: i32, %arg1: memref<16x32xf32, #tpu.memory_space<vmem>>, %arg2: memref<16x32xf32, #tpu.memory_space<vmem>>, %arg3: memref<32x128xbf16, #tpu.memory_space<vmem>>, %arg4: memref<32x128xbf16, #tpu.memory_space<vmem>>, %arg5: memref<32x128xbf16, #tpu.memory_space<vmem>>, %arg6: memref<1x128xf32, #tpu.memory_space<vmem>>, %arg7: memref<128x128xbf16, #tpu.memory_space<vmem>>, %arg8: memref<1x128xf32, #tpu.memory_space<vmem>>, %arg9: memref<16x128xf32, #tpu.memory_space<vmem>>) attributes {dimension_semantics = [#tpu.dimension_semantics<parallel>], iteration_bounds = array<i64: 1>, scalar_prefetch = 0 : i64, scratch_operands = 0 : i64, tpu.core_type = #tpu.core_type<tc>, window_params = [{transform_indices = @transform_0, window_bounds = array<i64: 16, 32>}, {transform_indices = @transform_1, window_bounds = array<i64: 16, 32>}, {pipeline_mode = #tpu.pipeline_mode<synchronous>, transform_indices = @transform_2, window_bounds = array<i64: 32, 128>}, {pipeline_mode = #tpu.pipeline_mode<synchronous>, transform_indices = @transform_3, window_bounds = array<i64: 32, 128>}, {pipeline_mode = #tpu.pipeline_mode<synchronous>, transform_indices = @transform_4, window_bounds = array<i64: 32, 128>}, {pipeline_mode = #tpu.pipeline_mode<synchronous>, transform_indices = @transform_5, window_bounds = array<i64: 1, 128>}, {pipeline_mode = #tpu.pipeline_mode<synchronous>, transform_indices = @transform_6, window_bounds = array<i64: 128, 128>}, {pipeline_mode = #tpu.pipeline_mode<synchronous>, transform_indices = @transform_7, window_bounds = array<i64: 1, 128>}, {transform_indices = @transform_8, window_bounds = array<i64: 16, 128>}]} {
    %c0 = arith.constant 0 : index
    %c0_0 = arith.constant 0 : index
    %0 = vector.load %arg1[%c0, %c0_0] : memref<16x32xf32, #tpu.memory_space<vmem>>, vector<16x32xf32>
    %1 = arith.truncf %0 : vector<16x32xf32> to vector<16x32xbf16>
    %c0_1 = arith.constant 0 : index
    %c0_2 = arith.constant 0 : index
    %2 = vector.load %arg2[%c0_1, %c0_2] : memref<16x32xf32, #tpu.memory_space<vmem>>, vector<16x32xf32>
    %3 = arith.truncf %2 : vector<16x32xf32> to vector<16x32xbf16>
    %4 = arith.mulf %1, %3 : vector<16x32xbf16>
    %c0_3 = arith.constant 0 : index
    %c0_4 = arith.constant 0 : index
    %5 = vector.load %arg3[%c0_3, %c0_4] : memref<32x128xbf16, #tpu.memory_space<vmem>>, vector<32x128xbf16>
    %cst = arith.constant dense<0.000000e+00> : vector<16x128xf32>
    %6 = tpu.matmul %1, %5, %cst {dimension_numbers = #tpu.dot_dimension_numbers<[1], [0], [0], [1], [0, 0, 1, 1], [], []>} : vector<16x32xbf16>, vector<32x128xbf16>, vector<16x128xf32> -> vector<16x128xf32>
    %c0_5 = arith.constant 0 : index
    %c0_6 = arith.constant 0 : index
    %7 = vector.load %arg4[%c0_5, %c0_6] : memref<32x128xbf16, #tpu.memory_space<vmem>>, vector<32x128xbf16>
    %cst_7 = arith.constant dense<0.000000e+00> : vector<16x128xf32>
    %8 = tpu.matmul %3, %7, %cst_7 {dimension_numbers = #tpu.dot_dimension_numbers<[1], [0], [0], [1], [0, 0, 1, 1], [], []>} : vector<16x32xbf16>, vector<32x128xbf16>, vector<16x128xf32> -> vector<16x128xf32>
    %9 = arith.addf %6, %8 : vector<16x128xf32>
    %c0_8 = arith.constant 0 : index
    %c0_9 = arith.constant 0 : index
    %10 = vector.load %arg5[%c0_8, %c0_9] : memref<32x128xbf16, #tpu.memory_space<vmem>>, vector<32x128xbf16>
    %cst_10 = arith.constant dense<0.000000e+00> : vector<16x128xf32>
    %11 = tpu.matmul %4, %10, %cst_10 {dimension_numbers = #tpu.dot_dimension_numbers<[1], [0], [0], [1], [0, 0, 1, 1], [], []>} : vector<16x32xbf16>, vector<32x128xbf16>, vector<16x128xf32> -> vector<16x128xf32>
    %12 = arith.addf %9, %11 : vector<16x128xf32>
    %c0_11 = arith.constant 0 : index
    %c0_12 = arith.constant 0 : index
    %13 = vector.load %arg6[%c0_11, %c0_12] : memref<1x128xf32, #tpu.memory_space<vmem>>, vector<1x128xf32>
    %14 = vector.broadcast %13 : vector<1x128xf32> to vector<16x128xf32>
    %15 = arith.addf %12, %14 : vector<16x128xf32>
    %cst_13 = arith.constant 0.000000e+00 : f32
    %16 = vector.broadcast %cst_13 : f32 to vector<16x128xf32>
    %17 = arith.maximumf %15, %16 : vector<16x128xf32>
    %18 = arith.truncf %17 : vector<16x128xf32> to vector<16x128xbf16>
    %c0_14 = arith.constant 0 : index
    %c0_15 = arith.constant 0 : index
    %19 = vector.load %arg7[%c0_14, %c0_15] : memref<128x128xbf16, #tpu.memory_space<vmem>>, vector<128x128xbf16>
    %cst_16 = arith.constant dense<0.000000e+00> : vector<16x128xf32>
    %20 = tpu.matmul %18, %19, %cst_16 {dimension_numbers = #tpu.dot_dimension_numbers<[1], [0], [0], [1], [0, 0, 1, 1], [], []>} : vector<16x128xbf16>, vector<128x128xbf16>, vector<16x128xf32> -> vector<16x128xf32>
    %c0_17 = arith.constant 0 : index
    %c0_18 = arith.constant 0 : index
    %21 = vector.load %arg8[%c0_17, %c0_18] : memref<1x128xf32, #tpu.memory_space<vmem>>, vector<1x128xf32>
    %22 = vector.broadcast %21 : vector<1x128xf32> to vector<16x128xf32>
    %23 = arith.addf %20, %22 : vector<16x128xf32>
    %c0_19 = arith.constant 0 : index
    %c0_20 = arith.constant 0 : index
    %24 = vector.load %arg9[%c0_19, %c0_20] : memref<16x128xf32, #tpu.memory_space<vmem>>, vector<16x128xf32>
    tpu.vector_store %arg9[%c0_19, %c0_20], %23 {strides = array<i32>} : memref<16x128xf32, #tpu.memory_space<vmem>>, vector<16x128xf32>,
    return
  }
  func.func @transform_0(%arg0: i32) -> (i32, i32) {
    %c0_i32 = arith.constant 0 : i32
    %c0_i32_0 = arith.constant 0 : i32
    return %arg0, %c0_i32 : i32, i32
  }
  func.func @transform_1(%arg0: i32) -> (i32, i32) {
    %c0_i32 = arith.constant 0 : i32
    %c0_i32_0 = arith.constant 0 : i32
    return %arg0, %c0_i32 : i32, i32
  }
  func.func @transform_2(%arg0: i32) -> (i32, i32) {
    %c0_i32 = arith.constant 0 : i32
    %c0_i32_0 = arith.constant 0 : i32
    %c0_i32_1 = arith.constant 0 : i32
    return %c0_i32, %c0_i32_0 : i32, i32
  }
  func.func @transform_3(%arg0: i32) -> (i32, i32) {
    %c0_i32 = arith.constant 0 : i32
    %c0_i32_0 = arith.constant 0 : i32
    %c0_i32_1 = arith.constant 0 : i32
    return %c0_i32, %c0_i32_0 : i32, i32
  }
  func.func @transform_4(%arg0: i32) -> (i32, i32) {
    %c0_i32 = arith.constant 0 : i32
    %c0_i32_0 = arith.constant 0 : i32
    %c0_i32_1 = arith.constant 0 : i32
    return %c0_i32, %c0_i32_0 : i32, i32
  }
  func.func @transform_5(%arg0: i32) -> (i32, i32) {
    %c0_i32 = arith.constant 0 : i32
    %c0_i32_0 = arith.constant 0 : i32
    %c0_i32_1 = arith.constant 0 : i32
    return %c0_i32, %c0_i32_0 : i32, i32
  }
  func.func @transform_6(%arg0: i32) -> (i32, i32) {
    %c0_i32 = arith.constant 0 : i32
    %c0_i32_0 = arith.constant 0 : i32
    %c0_i32_1 = arith.constant 0 : i32
    return %c0_i32, %c0_i32_0 : i32, i32
  }
  func.func @transform_7(%arg0: i32) -> (i32, i32) {
    %c0_i32 = arith.constant 0 : i32
    %c0_i32_0 = arith.constant 0 : i32
    %c0_i32_1 = arith.constant 0 : i32
    return %c0_i32, %c0_i32_0 : i32, i32
  }
  func.func @transform_8(%arg0: i32) -> (i32, i32) {
    %c0_i32 = arith.constant 0 : i32
    %c0_i32_0 = arith.constant 0 : i32
    return %arg0, %c0_i32 : i32, i32
  }
}

</mosaic_0001>

<bundles_post_ra>
// kernel: _lambda_.1
= control target key start
LH: loop header
LB: loop body
LE: loop exit
PB: predicated region body
PF: predicated region fallthrough
CT: control target
= control target key end

     0   :  { %13 = vsyncpa [#allocation3], 0  ;;  %s757_s0 = inlined_call_operand.vmem [shape: f32[16,32], index: 0, kind: input, shape index: {}]   ;;  %s758_s1 = inlined_call_operand.hbm [shape: f32[16,32], index: 1, kind: input, shape index: {}]   ;;  %s759_s2 = inlined_call_operand.hbm [shape: bf16[32,128], index: 2, kind: input, shape index: {}]   ;;  %s760_s3 = inlined_call_operand.hbm [shape: bf16[32,128], index: 3, kind: input, shape index: {}]   ;;  %s761_s4 = inlined_call_operand.vmem [shape: bf16[32,128], index: 4, kind: input, shape index: {}]   ;;  %s762_s5 = inlined_call_operand.vmem [shape: f32[1,128], index: 5, kind: input, shape index: {}]   ;;  %s763_s6 = inlined_call_operand.hbm [shape: bf16[128,128], index: 6, kind: input, shape index: {}]   ;;  %s764_s7 = inlined_call_operand.vmem [shape: f32[1,128], index: 7, kind: input, shape index: {}]   ;;  %s765_s8 = inlined_call_operand.vmem [shape: f32[16,128], index: 8, kind: output, shape index: {}]  }
   0x1   :  { %14 = vsyncpa [#allocation5], 0 }
   0x2   :  { %15 = vsyncpa [#allocation8], 0  ;;  %s607_s27 = smov [#allocation4]   ;;  %s513_s9 = scalar_lea.hbm %s759_s2, 256 }
   0x3   :  { %s35_s28 = sshll.u32 %s607_s27, 4  ;;  %p514_p0 = scmp.ne.s32.totalorder %s759_s2, %s513_s9  ;;  %s36_s28 = int_to_ptr.vmem [resolvable:$true] %s35_s28 }
   0x4   :  { %p517_p1 = scmp.lt.u32.totalorder %s513_s9, %s759_s2 }
   0x6   :  { %p519_p2 = pnand %p517_p1, %p514_p0 }
   0x8   :  { %522 = shalt.err (!%p519_p2)
}
   0x9   :  { %s523_s14 = scalar_lea.vmem %s36_s28, 256  ;;  %p528_p4 = scmp.lt.s32.totalorder %s36_s28, %s36_s28 }
   0xa   :  { %p524_p3 = scmp.ne.s32.totalorder %s36_s28, %s523_s14  ;;  %p529_p5 = scmp.lt.s32.totalorder %s523_s14, %s523_s14 }
   0xc   :  { %p530_p6 = por %p529_p5, %p528_p4 }
   0xe   :  { %p531_p7 = pnand %p530_p6, %p524_p3 }
  0x10   :  { %534 = shalt.err (!%p531_p7)
}
  0x11   :  { %s608_s15 = smov 64   ;;  %s609_s16 = smov 4  }
  0x12   :  { %41 = dma.hbm_to_vmem [thread:$0]  %s759_s2, 256, %s36_s28, [#allocation5], %s608_s15, %s608_s15, %s609_s16  }
  0x13   :  { %s610_s19 = smov [#allocation2]   ;;  %s535_s23 = scalar_lea.hbm %s758_s1, 256 }
  0x14   :  { %s23_s20 = sshll.u32 %s610_s19, 4  ;;  %p536_p8 = scmp.ne.s32.totalorder %s758_s1, %s535_s23  ;;  %s24_s20 = int_to_ptr.vmem [resolvable:$true] %s23_s20 }
  0x15   :  { %p539_p9 = scmp.lt.u32.totalorder %s535_s23, %s758_s1 }
  0x17   :  { %p541_p10 = pnand %p539_p9, %p536_p8 }
  0x19   :  { %544 = shalt.err (!%p541_p10)
}
  0x1a   :  { %s545_s29 = scalar_lea.vmem %s24_s20, 256  ;;  %p550_p12 = scmp.lt.s32.totalorder %s24_s20, %s24_s20 }
  0x1b   :  { %p546_p11 = scmp.ne.s32.totalorder %s24_s20, %s545_s29  ;;  %p551_p13 = scmp.lt.s32.totalorder %s545_s29, %s545_s29 }
  0x1d   :  { %p552_p0 = por %p551_p13, %p550_p12 }
  0x1f   :  { %p553_p1 = pnand %p552_p0, %p546_p11 }
  0x21   :  { %556 = shalt.err (!%p553_p1)
}
  0x22   :  { %s611_s2 = smov 128   ;;  %s612_s28 = smov 8  }
  0x23   :  { %29 = dma.hbm_to_vmem [thread:$0]  %s758_s1, 256, %s24_s20, [#allocation3], %s611_s2, %s611_s2, %s612_s28  }
  0x24   :  { %s613_s10 = smov [#allocation6]   ;;  %s614_s12 = smov [#allocation7]  }
  0x25   :  { %s47_s11 = sshll.u32 %s613_s10, 4  ;;  %s63_s13 = sshll.u32 %s614_s12, 4  ;;  %s48_s11 = int_to_ptr.vmem [resolvable:$true] %s47_s11  ;;  %s689_s13 = int_to_ptr.vmem [resolvable:$true] %s63_s13 }
  0x26   :  { %s557_s18 = scalar_lea.hbm %s760_s3, 256 }
  0x27   :  { %p558_p2 = scmp.ne.s32.totalorder %s760_s3, %s557_s18  ;;  %p561_p3 = scmp.lt.u32.totalorder %s557_s18, %s760_s3 }
  0x29   :  { %p563_p4 = pnand %p561_p3, %p558_p2 }
  0x2b   :  { %566 = shalt.err (!%p563_p4)
}
  0x2c   :  { %s567_s1 = scalar_lea.vmem %s48_s11, 256  ;;  %p572_p6 = scmp.lt.s32.totalorder %s48_s11, %s48_s11 }
  0x2d   :  { %p568_p5 = scmp.ne.s32.totalorder %s48_s11, %s567_s1  ;;  %p573_p7 = scmp.lt.s32.totalorder %s567_s1, %s567_s1 }
  0x2f   :  { %p574_p8 = por %p573_p7, %p572_p6 }
  0x31   :  { %p575_p9 = pnand %p574_p8, %p568_p5 }
  0x33   :  { %578 = shalt.err (!%p575_p9)
}
  0x34   :  { %53 = dma.hbm_to_vmem [thread:$0]  %s760_s3, 256, %s48_s11, [#allocation5], %s608_s15, %s608_s15, %s609_s16  }
  0x35   :  { %s579_s27 = scalar_lea.hbm %s763_s6, 1024 }
  0x36   :  { %p580_p10 = scmp.ne.s32.totalorder %s763_s6, %s579_s27  ;;  %p583_p11 = scmp.lt.u32.totalorder %s579_s27, %s763_s6 }
  0x38   :  { %p585_p12 = pnand %p583_p11, %p580_p10 }
  0x3a   :  { %588 = shalt.err (!%p585_p12)
}
  0x3b   :  { %s589_s9 = scalar_lea.vmem %s689_s13, 1024  ;;  %p594_p0 = scmp.lt.s32.totalorder %s689_s13, %s689_s13 }
  0x3c   :  { %p590_p13 = scmp.ne.s32.totalorder %s689_s13, %s589_s9  ;;  %p595_p1 = scmp.lt.s32.totalorder %s589_s9, %s589_s9 }
  0x3e   :  { %p596_p2 = por %p595_p1, %p594_p0 }
  0x40   :  { %p597_p3 = pnand %p596_p2, %p590_p13 }
  0x42   :  { %600 = shalt.err (!%p597_p3)
}
  0x43   :  { %69 = dma.hbm_to_vmem [thread:$0]  %s763_s6, 1024, %s689_s13, [#allocation8], %s608_s15, %s608_s15, %s609_s16  }
  0x44   :  { %601 = dma.done.wait [#allocation3], 256  }
  0x45   :  { %602 = vsyncadd [#allocation3], 4294967040 }
  0x46   :  { %603 = dma.done.wait [#allocation5], 512  }
  0x47   :  { %604 = vsyncadd [#allocation5], 4294966784 }
  0x48   :  { %605 = dma.done.wait [#allocation8], 1024  }
  0x49   :  { %606 = vsyncadd [#allocation8], 4294966272  ;;  %v615_v0 = vmov 0.0   ;;  %vm616_vm0 = vmmov 0   ;;  %v499_v1 = vld [vmem:[#allocation6] sm:$0xff]   ;;  %v500_v2 = vld [vmem:[#allocation6 + $0x8] sm:$0xff]  }
  0x4a   :  { %445 = vmatprep.subr.bf16.mxu0 %v615_v0  ;;  %449 = vmatprep.mubr.msk.bf16.mxu0 %vm616_vm0, %v615_v0  ;;  %v88_v3 = vld [vmem:[#allocation2] sm:$0xff]  ;;  %v89_v4 = vld [vmem:[#allocation2 + $0x8] sm:$0xff]  ;;  %vm112_vm1 = vcmask 261120   ;;  %v501_v6 = vld [vmem:[#allocation4] sm:$0xff]  }
  0x4b   :  { %469 = vmatprep.subr.bf16.mxu1 %v615_v0  ;;  %485 = vmatprep.mubr.msk.bf16.mxu1 %vm616_vm0, %v615_v0  ;;  %v90_v5 = vpack.c.bf16 %v89_v4, %v88_v3  ;;  %v85_v7 = vld [vmem:[%s757_s0] sm:$0xff]  ;;  %v86_v8 = vld [vmem:[%s757_s0 + $0x8] sm:$0xff]  ;;  %v502_v9 = vld [vmem:[#allocation4 + $0x8] sm:$0xff]  }
  0x4c   :  { %446 = vmatpush3.bf16.msra.mxu0 %v499_v1  ;;  %v505_v10 = vld [vmem:[#allocation7] sm:$0xff]   ;;  %v87_v11 = vpack.c.bf16 %v86_v8, %v85_v7  ;;  %v503_v12 = vld [vmem:[%s761_s4] sm:$0xff]   ;;  %v504_v13 = vld [vmem:[%s761_s4 + $0x8] sm:$0xff]  }
  0x4d   :  { %447 = vmatprep.subr.bf16.mxu0 %v615_v0  ;;  %470 = vmatpush3.bf16.msra.mxu1 %v505_v10  ;;  %v506_v15 = vld [vmem:[#allocation7 + $0x8] sm:$0xff]   ;;  %v507_v16 = vld [vmem:[#allocation7 + $0x10] sm:$0xff]   ;;  %v508_v17 = vld [vmem:[#allocation7 + $0x18] sm:$0xff]  }
  0x4e   :  { %471 = vmatprep.subr.bf16.mxu1 %v615_v0  ;;  %v91_v14 = vmul.bf16 %v90_v5, %v87_v11  ;;  %v509_v18 = vld [vmem:[#allocation7 + $0x20] sm:$0xff]   ;;  %v510_v19 = vld [vmem:[#allocation7 + $0x28] sm:$0xff]   ;;  %v511_v20 = vld [vmem:[#allocation7 + $0x30] sm:$0xff]  }
  0x4f   :  { %v512_v21 = vld [vmem:[#allocation7 + $0x38] sm:$0xff]   ;;  %v417_v33 = vld [vmem:[%s762_s5] ss:$0 sm:$0xff] }
  0x50   :  { %448 = vmatpush3.bf16.msra.mxu0 %v500_v2  ;;  %v418_v44 = vld [vmem:[%s764_s7] ss:$0 sm:$0xff] }
  0x51   :  { %453 = vmatprep.subr.bf16.mxu0 %v615_v0  ;;  %472 = vmatpush3.bf16.msra.mxu1 %v506_v15 }
  0x52   :  { %473 = vmatprep.subr.bf16.mxu1 %v615_v0 }
  0x53   :  { %450 = vmatmul.mubr.msk.bf16.vlgmr.msra.gmra.mrb[0].mxu0 %vm112_vm1, %v90_v5 }
  0x54   :  { %454 = vmatpush3.bf16.msra.mxu0 %v501_v6  ;;  %457 = vmatprep.mubr.msk.bf16.mxu0 %vm616_vm0, %v615_v0 }
  0x55   :  { %455 = vmatprep.subr.bf16.mxu0 %v615_v0  ;;  %474 = vmatpush3.bf16.msra.mxu1 %v507_v16 }
  0x56   :  { %475 = vmatprep.subr.bf16.mxu1 %v615_v0 }
  0x58   :  { %456 = vmatpush3.bf16.msra.mxu0 %v502_v9 }
  0x59   :  { %461 = vmatprep.subr.bf16.mxu0 %v615_v0  ;;  %476 = vmatpush3.bf16.msra.mxu1 %v508_v17 }
  0x5a   :  { %477 = vmatprep.subr.bf16.mxu1 %v615_v0 }
  0x5b   :  { %458 = vmatmul.mubr.msk.bf16.vlgmr.msra.gmra.mrb[4].mxu0 %vm112_vm1, %v87_v11 }
  0x5c   :  { %462 = vmatpush3.bf16.msra.mxu0 %v503_v12  ;;  %465 = vmatprep.mubr.msk.bf16.mxu0 %vm616_vm0, %v615_v0 }
  0x5d   :  { %463 = vmatprep.subr.bf16.mxu0 %v615_v0  ;;  %478 = vmatpush3.bf16.msra.mxu1 %v509_v18 }
  0x5e   :  { %479 = vmatprep.subr.bf16.mxu1 %v615_v0 }
  0x60   :  { %464 = vmatpush3.bf16.msra.mxu0 %v504_v13 }
  0x61   :  { %480 = vmatpush3.bf16.msra.mxu1 %v510_v19 }
  0x62   :  { %481 = vmatprep.subr.bf16.mxu1 %v615_v0 }
  0x63   :  { %466 = vmatmul.mubr.msk.bf16.vlgmr.msra.gmra.mrb[8].mxu0 %vm112_vm1, %v91_v14 }
  0x65   :  { %482 = vmatpush3.bf16.msra.mxu1 %v511_v20 }
  0x66   :  { %483 = vmatprep.subr.bf16.mxu1 %v615_v0 }
  0x69   :  { %484 = vmatpush3.bf16.msra.mxu1 %v512_v21 }
 0x126   :  { %v150_v22 = vpop.f32.mrb[0].mxu0 }
 0x127   :  { %v451_v23 = vpop.f32.mrb[1].mxu0 }
 0x128   :  { %v153_v24 = vpop.f32.mrb[2].mxu0 }
 0x129   :  { %v452_v25 = vpop.f32.mrb[3].mxu0 }
 0x12e   :  { %v206_v26 = vpop.f32.mrb[4].mxu0 }
 0x12f   :  { %v207_v27 = vadd.f32 %v206_v26, %v150_v22  ;;  %v459_v28 = vpop.f32.mrb[5].mxu0 }
 0x130   :  { %v209_v29 = vpop.f32.mrb[6].mxu0 }
 0x131   :  { %v210_v30 = vadd.f32 %v209_v29, %v153_v24  ;;  %v460_v31 = vpop.f32.mrb[7].mxu0 }
 0x136   :  { %v266_v32 = vpop.f32.mrb[8].mxu0 }
 0x137   :  { %v273_v34 = vadd.f32 %v266_v32, %v207_v27  ;;  %v467_v35 = vpop.f32.mrb[9].mxu0 }
 0x138   :  { %v269_v36 = vpop.f32.mrb[10].mxu0 }
 0x139   :  { %v282_v37 = vadd.f32 %v417_v33, %v273_v34  ;;  %v274_v38 = vadd.f32 %v269_v36, %v210_v30  ;;  %v468_v39 = vpop.f32.mrb[11].mxu0 }
 0x13b   :  { %v283_v40 = vadd.f32 %v417_v33, %v274_v38  ;;  %v284_v41 = vmax.f32 %v282_v37, 0.0 }
 0x13d   :  { %v285_v42 = vmax.f32 %v283_v40, 0.0 }
 0x13f   :  { %v286_v43 = vpack.c.bf16 %v285_v42, %v284_v41 }
 0x141   :  { %486 = vmatmul.mubr.bf16.vlgmr.msra.gmra.mrb[0].mxu1 %v286_v43 }
 0x214   :  { %v392_v45 = vpop.f32.mrb[0].mxu1 }
 0x215   :  { %v393_v46 = vadd.f32 %v418_v44, %v392_v45  ;;  %v487_v47 = vpop.f32.mrb[1].mxu1 }
 0x216   :  { %v395_v48 = vpop.f32.mrb[2].mxu1 }
 0x217   :  { %399 = vst [vmem:[%s765_s8] sm:$0xff] %v393_v46  ;;  %v396_v49 = vadd.f32 %v418_v44, %v395_v48  ;;  %v488_v50 = vpop.f32.mrb[3].mxu1 }
 0x219   :  { %400 = vst [vmem:[%s765_s8 + $0x8] sm:$0xff] %v396_v49 }
 0x21a   :  { %405 = vsyncpa [#allocation3], 1 }
 0x21b   :  { %406 = vsyncpa [#allocation5], 1 }
 0x21c   :  { %407 = vsyncpa [#allocation8], 1 }

</bundles_post_ra>
